<compile_context>
chip_gen: v5e
topology: v5e:2x2
jax: 0.10.0
libtpu: 0.0.40
codegen_flags: <defaults>
</compile_context>

<pallas_src>
import jax
import jax.numpy as jnp
from jax.experimental import pallas as pl
from jax.experimental.pallas import tpu as pltpu


def make_feature_extractor_kernel(S, B, D, H):
    def kernel(x_ref, w_ih_ref, w_hh_ref, b_ref, w_fc_ref, b_fc_ref, out_ref, hseq_sc):
        """x_ref:    (S*B, D)   flattened input sequence
           w_ih_ref: (D, 4H)    LSTM input weights (pre-transposed, gate order i,f,o,g)
           w_hh_ref: (H, 4H)    LSTM hidden weights (pre-transposed, gate order i,f,o,g)
           b_ref:    (1, 4H)    combined LSTM bias (b_ih + b_hh), same gate order
           w_fc_ref: (H, H)     FC weights (pre-transposed: y = x @ W + b)
           b_fc_ref: (1, H)     FC bias
           out_ref:  (S*B, H)   softmax(fc(relu(h_t))) rows in time-major order
           hseq_sc:  (S*B, H)   f32 VMEM scratch holding h_t for every step
        """
        # 1) Input projection for every timestep in one MXU matmul (off the critical path).
        xw = (jnp.dot(x_ref[...], w_ih_ref[...], preferred_element_type=jnp.float32)
              + b_ref[...])                                   # (S*B, 4H)
        w_hh = w_hh_ref[...]                                  # hoist weight load out of the loop

        # 2) Serial LSTM recurrence, fully unrolled (S is small & static); h/c live in vregs.
        h = jnp.zeros((B, H), jnp.float32)
        c = jnp.zeros((B, H), jnp.float32)
        for t in range(S):
            gates = (xw[t * B:(t + 1) * B, :]
                     + jnp.dot(h, w_hh, preferred_element_type=jnp.float32))  # (B, 4H)
            # Gate order (i, f, o, g): one sigmoid over a contiguous 3H slab, tanh on last H.
            sig = jax.nn.sigmoid(gates[:, :3 * H])
            i_g = sig[:, 0 * H:1 * H]
            f_g = sig[:, 1 * H:2 * H]
            o_g = sig[:, 2 * H:3 * H]
            g_g = jnp.tanh(gates[:, 3 * H:4 * H])
            c = f_g * c + i_g * g_g
            h = o_g * jnp.tanh(c)
            hseq_sc[t * B:(t + 1) * B, :] = h                 # stash h_t; not on the dep chain

        # 3) Head hoisted out of the loop: ReLU -> FC -> softmax once, one bulk store.
        z = jnp.maximum(hseq_sc[...], 0.0)                    # (S*B, H)
        logits = (jnp.dot(z, w_fc_ref[...], preferred_element_type=jnp.float32)
                  + b_fc_ref[...])
        m = jnp.max(logits, axis=-1, keepdims=True)
        e = jnp.exp(logits - m)
        probs = e * pl.reciprocal(jnp.sum(e, axis=-1, keepdims=True), approx=False)
        out_ref[...] = probs.astype(out_ref.dtype)

    return kernel


def feature_extractor(x, params):
    """x: (S, B, D) float32. Returns (S*B, H) float32 (matches PyTorch forward)."""
    S, B, D = x.shape
    H = params["w_hh"].shape[1]
    w_ih, w_hh, b, w_fc, b_fc = pack_kernel_params(params)
    x2d = x.reshape(S * B, D)

    vmem = pl.BlockSpec(memory_space=pltpu.MemorySpace.VMEM)
    out = pl.pallas_call(
        make_feature_extractor_kernel(S, B, D, H),
        out_shape=jax.ShapeDtypeStruct((S * B, H), jnp.float32),
        in_specs=[vmem] * 6,
        out_specs=vmem,
        scratch_shapes=[pltpu.VMEM((S * B, H), jnp.float32)],
    )(x2d, w_ih, w_hh, b, w_fc, b_fc)
    return out


def init_params(key, state_dim, hidden_dim):
    """Deterministic synthetic parameters with PyTorch-equivalent shapes & gate order
    (weight_ih_l0: (4H, D), weight_hh_l0: (4H, H), gates packed (i, f, g, o))."""
    H = hidden_dim
    k = jax.random.split(key, 6)
    s = 1.0 / jnp.sqrt(H)
    return {
        "w_ih": jax.random.uniform(k[0], (4 * H, state_dim), jnp.float32, -s, s),
        "w_hh": jax.random.uniform(k[1], (4 * H, H), jnp.float32, -s, s),
        "b_ih": jax.random.uniform(k[2], (4 * H,), jnp.float32, -s, s),
        "b_hh": jax.random.uniform(k[3], (4 * H,), jnp.float32, -s, s),
        "w_fc": jax.random.uniform(k[4], (H, H), jnp.float32, -s, s),
        "b_fc": jax.random.uniform(k[5], (H,), jnp.float32, -s, s),
    }


def pack_kernel_params(p):
    """PyTorch layout -> kernel layout: permute gate blocks (i,f,g,o)->(i,f,o,g),
    pre-transpose so the kernel does x @ W, and fuse the two LSTM biases."""
    H = p["w_hh"].shape[1]
    perm = jnp.concatenate([jnp.arange(0, 2 * H),          # i, f
                            jnp.arange(3 * H, 4 * H),      # o
                            jnp.arange(2 * H, 3 * H)])     # g
    w_ih = jnp.transpose(p["w_ih"][perm])                  # (D, 4H)
    w_hh = jnp.transpose(p["w_hh"][perm])                  # (H, 4H)
    b = (p["b_ih"] + p["b_hh"])[perm].reshape(1, 4 * H)    # (1, 4H)
    w_fc = jnp.transpose(p["w_fc"])                        # (H, H)
    b_fc = p["b_fc"].reshape(1, H)                         # (1, H)
    return w_ih, w_hh, b, w_fc, b_fc


def reference_forward(x, p):
    """Pure-JAX reference reproducing the PyTorch forward semantics (PyTorch gate order)."""
    S, B, D = x.shape
    H = p["w_hh"].shape[1]
    w_ih_t = p["w_ih"].T
    w_hh_t = p["w_hh"].T
    b = (p["b_ih"] + p["b_hh"]).reshape(1, 4 * H)
    h = jnp.zeros((B, H), jnp.float32)
    c = jnp.zeros((B, H), jnp.float32)
    hs = []
    for t in range(S):
        gates = x[t] @ w_ih_t + h @ w_hh_t + b
        i = jax.nn.sigmoid(gates[:, :H])
        f = jax.nn.sigmoid(gates[:, H:2 * H])
        g = jnp.tanh(gates[:, 2 * H:3 * H])
        o = jax.nn.sigmoid(gates[:, 3 * H:])
        c = f * c + i * g
        h = o * jnp.tanh(c)
        hs.append(h)
    lstm_out = jnp.stack(hs, axis=0).reshape(-1, H)
    z = jnp.maximum(lstm_out, 0.0)
    logits = z @ p["w_fc"].T + p["b_fc"]
    return jax.nn.softmax(logits, axis=1)


if __name__ == "__main__":
    seq_len, batch, state_dim, hidden_dim = 8, 2, 16, 32

    key = jax.random.PRNGKey(0)
    kx, kp = jax.random.split(key)
    x = jax.random.normal(kx, (seq_len, batch, state_dim), jnp.float32)
    params = init_params(kp, state_dim, hidden_dim)

    out = feature_extractor(x, params)
    out = jax.block_until_ready(out)

    ref = reference_forward(x, params)
    assert out.shape == (seq_len * batch, hidden_dim)
    assert jnp.allclose(out, ref, atol=1e-5, rtol=1e-5)

    print("KERNEL_OK")
</pallas_src>

<mosaic_0001>
module attributes {stable_mosaic.version = 11 : i64} {
  func.func @kernel(%arg0: memref<16x16xf32, #tpu.memory_space<vmem>>, %arg1: memref<16x128xf32, #tpu.memory_space<vmem>>, %arg2: memref<32x128xf32, #tpu.memory_space<vmem>>, %arg3: memref<1x128xf32, #tpu.memory_space<vmem>>, %arg4: memref<32x32xf32, #tpu.memory_space<vmem>>, %arg5: memref<1x32xf32, #tpu.memory_space<vmem>>, %arg6: memref<16x32xf32, #tpu.memory_space<vmem>>, %arg7: memref<16x32xf32, #tpu.memory_space<vmem>>) attributes {dimension_semantics = [], scalar_prefetch = 0 : i64, scratch_operands = 1 : i64, tpu.core_type = #tpu.core_type<tc>} {
    %c0 = arith.constant 0 : index
    %c0_0 = arith.constant 0 : index
    %0 = vector.load %arg0[%c0, %c0_0] : memref<16x16xf32, #tpu.memory_space<vmem>>, vector<16x16xf32>
    %c0_1 = arith.constant 0 : index
    %c0_2 = arith.constant 0 : index
    %1 = vector.load %arg1[%c0_1, %c0_2] : memref<16x128xf32, #tpu.memory_space<vmem>>, vector<16x128xf32>
    %cst = arith.constant dense<0.000000e+00> : vector<16x128xf32>
    %2 = tpu.matmul %0, %1, %cst {dimension_numbers = #tpu.dot_dimension_numbers<[1], [0], [0], [1], [0, 0, 1, 1], [], []>} : vector<16x16xf32>, vector<16x128xf32>, vector<16x128xf32> -> vector<16x128xf32>
    %c0_3 = arith.constant 0 : index
    %c0_4 = arith.constant 0 : index
    %3 = vector.load %arg3[%c0_3, %c0_4] : memref<1x128xf32, #tpu.memory_space<vmem>>, vector<1x128xf32>
    %4 = vector.broadcast %3 : vector<1x128xf32> to vector<16x128xf32>
    %5 = arith.addf %2, %4 : vector<16x128xf32>
    %c0_5 = arith.constant 0 : index
    %c0_6 = arith.constant 0 : index
    %6 = vector.load %arg2[%c0_5, %c0_6] : memref<32x128xf32, #tpu.memory_space<vmem>>, vector<32x128xf32>
    %cst_7 = arith.constant 0.000000e+00 : f32
    %7 = vector.broadcast %cst_7 : f32 to vector<2x32xf32>
    %cst_8 = arith.constant 0.000000e+00 : f32
    %8 = vector.broadcast %cst_8 : f32 to vector<2x32xf32>
    %9 = vector.extract_strided_slice %5 {offsets = [0, 0], sizes = [2, 128], strides = [1, 1]} : vector<16x128xf32> to vector<2x128xf32>
    %cst_9 = arith.constant dense<0.000000e+00> : vector<2x128xf32>
    %10 = tpu.matmul %7, %6, %cst_9 {dimension_numbers = #tpu.dot_dimension_numbers<[1], [0], [0], [1], [0, 0, 1, 1], [], []>} : vector<2x32xf32>, vector<32x128xf32>, vector<2x128xf32> -> vector<2x128xf32>
    %11 = arith.addf %9, %10 : vector<2x128xf32>
    %12 = vector.extract_strided_slice %11 {offsets = [0, 0], sizes = [2, 96], strides = [1, 1]} : vector<2x128xf32> to vector<2x96xf32>
    %13 = arith.negf %12 : vector<2x96xf32>
    %14 = math.exp %13 : vector<2x96xf32>
    %cst_10 = arith.constant 1.000000e+00 : f32
    %15 = vector.broadcast %cst_10 : f32 to vector<2x96xf32>
    %16 = arith.addf %15, %14 : vector<2x96xf32>
    %17 = arith.divf %15, %16 : vector<2x96xf32>
    %18 = vector.extract_strided_slice %17 {offsets = [0, 0], sizes = [2, 32], strides = [1, 1]} : vector<2x96xf32> to vector<2x32xf32>
    %19 = vector.extract_strided_slice %17 {offsets = [0, 32], sizes = [2, 32], strides = [1, 1]} : vector<2x96xf32> to vector<2x32xf32>
    %20 = vector.extract_strided_slice %17 {offsets = [0, 64], sizes = [2, 32], strides = [1, 1]} : vector<2x96xf32> to vector<2x32xf32>
    %21 = vector.extract_strided_slice %11 {offsets = [0, 96], sizes = [2, 32], strides = [1, 1]} : vector<2x128xf32> to vector<2x32xf32>
    %22 = math.tanh %21 : vector<2x32xf32>
    %23 = arith.mulf %19, %8 : vector<2x32xf32>
    %24 = arith.mulf %18, %22 : vector<2x32xf32>
    %25 = arith.addf %23, %24 : vector<2x32xf32>
    %26 = math.tanh %25 : vector<2x32xf32>
    %27 = arith.mulf %20, %26 : vector<2x32xf32>
    %c0_11 = arith.constant 0 : index
    %c0_12 = arith.constant 0 : index
    %28 = vector.load %arg7[%c0_11, %c0_12] : memref<16x32xf32, #tpu.memory_space<vmem>>, vector<2x32xf32>
    tpu.vector_store %arg7[%c0_11, %c0_12], %27 {strides = array<i32>} : memref<16x32xf32, #tpu.memory_space<vmem>>, vector<2x32xf32>,
    %29 = vector.extract_strided_slice %5 {offsets = [2, 0], sizes = [2, 128], strides = [1, 1]} : vector<16x128xf32> to vector<2x128xf32>
    %cst_13 = arith.constant dense<0.000000e+00> : vector<2x128xf32>
    %30 = tpu.matmul %27, %6, %cst_13 {dimension_numbers = #tpu.dot_dimension_numbers<[1], [0], [0], [1], [0, 0, 1, 1], [], []>} : vector<2x32xf32>, vector<32x128xf32>, vector<2x128xf32> -> vector<2x128xf32>
    %31 = arith.addf %29, %30 : vector<2x128xf32>
    %32 = vector.extract_strided_slice %31 {offsets = [0, 0], sizes = [2, 96], strides = [1, 1]} : vector<2x128xf32> to vector<2x96xf32>
    %33 = arith.negf %32 : vector<2x96xf32>
    %34 = math.exp %33 : vector<2x96xf32>
    %cst_14 = arith.constant 1.000000e+00 : f32
    %35 = vector.broadcast %cst_14 : f32 to vector<2x96xf32>
    %36 = arith.addf %35, %34 : vector<2x96xf32>
    %37 = arith.divf %35, %36 : vector<2x96xf32>
    %38 = vector.extract_strided_slice %37 {offsets = [0, 0], sizes = [2, 32], strides = [1, 1]} : vector<2x96xf32> to vector<2x32xf32>
    %39 = vector.extract_strided_slice %37 {offsets = [0, 32], sizes = [2, 32], strides = [1, 1]} : vector<2x96xf32> to vector<2x32xf32>
    %40 = vector.extract_strided_slice %37 {offsets = [0, 64], sizes = [2, 32], strides = [1, 1]} : vector<2x96xf32> to vector<2x32xf32>
    %41 = vector.extract_strided_slice %31 {offsets = [0, 96], sizes = [2, 32], strides = [1, 1]} : vector<2x128xf32> to vector<2x32xf32>
    %42 = math.tanh %41 : vector<2x32xf32>
    %43 = arith.mulf %39, %25 : vector<2x32xf32>
    %44 = arith.mulf %38, %42 : vector<2x32xf32>
    %45 = arith.addf %43, %44 : vector<2x32xf32>
    %46 = math.tanh %45 : vector<2x32xf32>
    %47 = arith.mulf %40, %46 : vector<2x32xf32>
    %c2 = arith.constant 2 : index
    %c0_15 = arith.constant 0 : index
    %48 = vector.load %arg7[%c2, %c0_15] : memref<16x32xf32, #tpu.memory_space<vmem>>, vector<2x32xf32>
    tpu.vector_store %arg7[%c2, %c0_15], %47 {strides = array<i32>} : memref<16x32xf32, #tpu.memory_space<vmem>>, vector<2x32xf32>,
    %49 = vector.extract_strided_slice %5 {offsets = [4, 0], sizes = [2, 128], strides = [1, 1]} : vector<16x128xf32> to vector<2x128xf32>
    %cst_16 = arith.constant dense<0.000000e+00> : vector<2x128xf32>
    %50 = tpu.matmul %47, %6, %cst_16 {dimension_numbers = #tpu.dot_dimension_numbers<[1], [0], [0], [1], [0, 0, 1, 1], [], []>} : vector<2x32xf32>, vector<32x128xf32>, vector<2x128xf32> -> vector<2x128xf32>
    %51 = arith.addf %49, %50 : vector<2x128xf32>
    %52 = vector.extract_strided_slice %51 {offsets = [0, 0], sizes = [2, 96], strides = [1, 1]} : vector<2x128xf32> to vector<2x96xf32>
    %53 = arith.negf %52 : vector<2x96xf32>
    %54 = math.exp %53 : vector<2x96xf32>
    %cst_17 = arith.constant 1.000000e+00 : f32
    %55 = vector.broadcast %cst_17 : f32 to vector<2x96xf32>
    %56 = arith.addf %55, %54 : vector<2x96xf32>
    %57 = arith.divf %55, %56 : vector<2x96xf32>
    %58 = vector.extract_strided_slice %57 {offsets = [0, 0], sizes = [2, 32], strides = [1, 1]} : vector<2x96xf32> to vector<2x32xf32>
    %59 = vector.extract_strided_slice %57 {offsets = [0, 32], sizes = [2, 32], strides = [1, 1]} : vector<2x96xf32> to vector<2x32xf32>
    %60 = vector.extract_strided_slice %57 {offsets = [0, 64], sizes = [2, 32], strides = [1, 1]} : vector<2x96xf32> to vector<2x32xf32>
    %61 = vector.extract_strided_slice %51 {offsets = [0, 96], sizes = [2, 32], strides = [1, 1]} : vector<2x128xf32> to vector<2x32xf32>
    %62 = math.tanh %61 : vector<2x32xf32>
    %63 = arith.mulf %59, %45 : vector<2x32xf32>
    %64 = arith.mulf %58, %62 : vector<2x32xf32>
    %65 = arith.addf %63, %64 : vector<2x32xf32>
    %66 = math.tanh %65 : vector<2x32xf32>
    %67 = arith.mulf %60, %66 : vector<2x32xf32>
    %c4 = arith.constant 4 : index
    %c0_18 = arith.constant 0 : index
    %68 = vector.load %arg7[%c4, %c0_18] : memref<16x32xf32, #tpu.memory_space<vmem>>, vector<2x32xf32>
    tpu.vector_store %arg7[%c4, %c0_18], %67 {strides = array<i32>} : memref<16x32xf32, #tpu.memory_space<vmem>>, vector<2x32xf32>,
    %69 = vector.extract_strided_slice %5 {offsets = [6, 0], sizes = [2, 128], strides = [1, 1]} : vector<16x128xf32> to vector<2x128xf32>
    %cst_19 = arith.constant dense<0.000000e+00> : vector<2x128xf32>
    %70 = tpu.matmul %67, %6, %cst_19 {dimension_numbers = #tpu.dot_dimension_numbers<[1], [0], [0], [1], [0, 0, 1, 1], [], []>} : vector<2x32xf32>, vector<32x128xf32>, vector<2x128xf32> -> vector<2x128xf32>
    %71 = arith.addf %69, %70 : vector<2x128xf32>
    %72 = vector.extract_strided_slice %71 {offsets = [0, 0], sizes = [2, 96], strides = [1, 1]} : vector<2x128xf32> to vector<2x96xf32>
    %73 = arith.negf %72 : vector<2x96xf32>
    %74 = math.exp %73 : vector<2x96xf32>
    %cst_20 = arith.constant 1.000000e+00 : f32
    %75 = vector.broadcast %cst_20 : f32 to vector<2x96xf32>
    %76 = arith.addf %75, %74 : vector<2x96xf32>
    %77 = arith.divf %75, %76 : vector<2x96xf32>
    %78 = vector.extract_strided_slice %77 {offsets = [0, 0], sizes = [2, 32], strides = [1, 1]} : vector<2x96xf32> to vector<2x32xf32>
    %79 = vector.extract_strided_slice %77 {offsets = [0, 32], sizes = [2, 32], strides = [1, 1]} : vector<2x96xf32> to vector<2x32xf32>
    %80 = vector.extract_strided_slice %77 {offsets = [0, 64], sizes = [2, 32], strides = [1, 1]} : vector<2x96xf32> to vector<2x32xf32>
    %81 = vector.extract_strided_slice %71 {offsets = [0, 96], sizes = [2, 32], strides = [1, 1]} : vector<2x128xf32> to vector<2x32xf32>
    %82 = math.tanh %81 : vector<2x32xf32>
    %83 = arith.mulf %79, %65 : vector<2x32xf32>
    %84 = arith.mulf %78, %82 : vector<2x32xf32>
    %85 = arith.addf %83, %84 : vector<2x32xf32>
    %86 = math.tanh %85 : vector<2x32xf32>
    %87 = arith.mulf %80, %86 : vector<2x32xf32>
    %c6 = arith.constant 6 : index
    %c0_21 = arith.constant 0 : index
    %88 = vector.load %arg7[%c6, %c0_21] : memref<16x32xf32, #tpu.memory_space<vmem>>, vector<2x32xf32>
    tpu.vector_store %arg7[%c6, %c0_21], %87 {strides = array<i32>} : memref<16x32xf32, #tpu.memory_space<vmem>>, vector<2x32xf32>,
    %89 = vector.extract_strided_slice %5 {offsets = [8, 0], sizes = [2, 128], strides = [1, 1]} : vector<16x128xf32> to vector<2x128xf32>
    %cst_22 = arith.constant dense<0.000000e+00> : vector<2x128xf32>
    %90 = tpu.matmul %87, %6, %cst_22 {dimension_numbers = #tpu.dot_dimension_numbers<[1], [0], [0], [1], [0, 0, 1, 1], [], []>} : vector<2x32xf32>, vector<32x128xf32>, vector<2x128xf32> -> vector<2x128xf32>
    %91 = arith.addf %89, %90 : vector<2x128xf32>
    %92 = vector.extract_strided_slice %91 {offsets = [0, 0], sizes = [2, 96], strides = [1, 1]} : vector<2x128xf32> to vector<2x96xf32>
    %93 = arith.negf %92 : vector<2x96xf32>
    %94 = math.exp %93 : vector<2x96xf32>
    %cst_23 = arith.constant 1.000000e+00 : f32
    %95 = vector.broadcast %cst_23 : f32 to vector<2x96xf32>
    %96 = arith.addf %95, %94 : vector<2x96xf32>
    %97 = arith.divf %95, %96 : vector<2x96xf32>
    %98 = vector.extract_strided_slice %97 {offsets = [0, 0], sizes = [2, 32], strides = [1, 1]} : vector<2x96xf32> to vector<2x32xf32>
    %99 = vector.extract_strided_slice %97 {offsets = [0, 32], sizes = [2, 32], strides = [1, 1]} : vector<2x96xf32> to vector<2x32xf32>
    %100 = vector.extract_strided_slice %97 {offsets = [0, 64], sizes = [2, 32], strides = [1, 1]} : vector<2x96xf32> to vector<2x32xf32>
    %101 = vector.extract_strided_slice %91 {offsets = [0, 96], sizes = [2, 32], strides = [1, 1]} : vector<2x128xf32> to vector<2x32xf32>
    %102 = math.tanh %101 : vector<2x32xf32>
    %103 = arith.mulf %99, %85 : vector<2x32xf32>
    %104 = arith.mulf %98, %102 : vector<2x32xf32>
    %105 = arith.addf %103, %104 : vector<2x32xf32>
    %106 = math.tanh %105 : vector<2x32xf32>
    %107 = arith.mulf %100, %106 : vector<2x32xf32>
    %c8 = arith.constant 8 : index
    %c0_24 = arith.constant 0 : index
    %108 = vector.load %arg7[%c8, %c0_24] : memref<16x32xf32, #tpu.memory_space<vmem>>, vector<2x32xf32>
    tpu.vector_store %arg7[%c8, %c0_24], %107 {strides = array<i32>} : memref<16x32xf32, #tpu.memory_space<vmem>>, vector<2x32xf32>,
    %109 = vector.extract_strided_slice %5 {offsets = [10, 0], sizes = [2, 128], strides = [1, 1]} : vector<16x128xf32> to vector<2x128xf32>
    %cst_25 = arith.constant dense<0.000000e+00> : vector<2x128xf32>
    %110 = tpu.matmul %107, %6, %cst_25 {dimension_numbers = #tpu.dot_dimension_numbers<[1], [0], [0], [1], [0, 0, 1, 1], [], []>} : vector<2x32xf32>, vector<32x128xf32>, vector<2x128xf32> -> vector<2x128xf32>
    %111 = arith.addf %109, %110 : vector<2x128xf32>
    %112 = vector.extract_strided_slice %111 {offsets = [0, 0], sizes = [2, 96], strides = [1, 1]} : vector<2x128xf32> to vector<2x96xf32>
    %113 = arith.negf %112 : vector<2x96xf32>
    %114 = math.exp %113 : vector<2x96xf32>
    %cst_26 = arith.constant 1.000000e+00 : f32
    %115 = vector.broadcast %cst_26 : f32 to vector<2x96xf32>
    %116 = arith.addf %115, %114 : vector<2x96xf32>
    %117 = arith.divf %115, %116 : vector<2x96xf32>
    %118 = vector.extract_strided_slice %117 {offsets = [0, 0], sizes = [2, 32], strides = [1, 1]} : vector<2x96xf32> to vector<2x32xf32>
    %119 = vector.extract_strided_slice %117 {offsets = [0, 32], sizes = [2, 32], strides = [1, 1]} : vector<2x96xf32> to vector<2x32xf32>
    %120 = vector.extract_strided_slice %117 {offsets = [0, 64], sizes = [2, 32], strides = [1, 1]} : vector<2x96xf32> to vector<2x32xf32>
    %121 = vector.extract_strided_slice %111 {offsets = [0, 96], sizes = [2, 32], strides = [1, 1]} : vector<2x128xf32> to vector<2x32xf32>
    %122 = math.tanh %121 : vector<2x32xf32>
    %123 = arith.mulf %119, %105 : vector<2x32xf32>
    %124 = arith.mulf %118, %122 : vector<2x32xf32>
    %125 = arith.addf %123, %124 : vector<2x32xf32>
    %126 = math.tanh %125 : vector<2x32xf32>
    %127 = arith.mulf %120, %126 : vector<2x32xf32>
    %c10 = arith.constant 10 : index
    %c0_27 = arith.constant 0 : index
    %128 = vector.load %arg7[%c10, %c0_27] : memref<16x32xf32, #tpu.memory_space<vmem>>, vector<2x32xf32>
    tpu.vector_store %arg7[%c10, %c0_27], %127 {strides = array<i32>} : memref<16x32xf32, #tpu.memory_space<vmem>>, vector<2x32xf32>,
    %129 = vector.extract_strided_slice %5 {offsets = [12, 0], sizes = [2, 128], strides = [1, 1]} : vector<16x128xf32> to vector<2x128xf32>
    %cst_28 = arith.constant dense<0.000000e+00> : vector<2x128xf32>
    %130 = tpu.matmul %127, %6, %cst_28 {dimension_numbers = #tpu.dot_dimension_numbers<[1], [0], [0], [1], [0, 0, 1, 1], [], []>} : vector<2x32xf32>, vector<32x128xf32>, vector<2x128xf32> -> vector<2x128xf32>
    %131 = arith.addf %129, %130 : vector<2x128xf32>
    %132 = vector.extract_strided_slice %131 {offsets = [0, 0], sizes = [2, 96], strides = [1, 1]} : vector<2x128xf32> to vector<2x96xf32>
    %133 = arith.negf %132 : vector<2x96xf32>
    %134 = math.exp %133 : vector<2x96xf32>
    %cst_29 = arith.constant 1.000000e+00 : f32
    %135 = vector.broadcast %cst_29 : f32 to vector<2x96xf32>
    %136 = arith.addf %135, %134 : vector<2x96xf32>
    %137 = arith.divf %135, %136 : vector<2x96xf32>
    %138 = vector.extract_strided_slice %137 {offsets = [0, 0], sizes = [2, 32], strides = [1, 1]} : vector<2x96xf32> to vector<2x32xf32>
    %139 = vector.extract_strided_slice %137 {offsets = [0, 32], sizes = [2, 32], strides = [1, 1]} : vector<2x96xf32> to vector<2x32xf32>
    %140 = vector.extract_strided_slice %137 {offsets = [0, 64], sizes = [2, 32], strides = [1, 1]} : vector<2x96xf32> to vector<2x32xf32>
    %141 = vector.extract_strided_slice %131 {offsets = [0, 96], sizes = [2, 32], strides = [1, 1]} : vector<2x128xf32> to vector<2x32xf32>
    %142 = math.tanh %141 : vector<2x32xf32>
    %143 = arith.mulf %139, %125 : vector<2x32xf32>
    %144 = arith.mulf %138, %142 : vector<2x32xf32>
    %145 = arith.addf %143, %144 : vector<2x32xf32>
    %146 = math.tanh %145 : vector<2x32xf32>
    %147 = arith.mulf %140, %146 : vector<2x32xf32>
    %c12 = arith.constant 12 : index
    %c0_30 = arith.constant 0 : index
    %148 = vector.load %arg7[%c12, %c0_30] : memref<16x32xf32, #tpu.memory_space<vmem>>, vector<2x32xf32>
    tpu.vector_store %arg7[%c12, %c0_30], %147 {strides = array<i32>} : memref<16x32xf32, #tpu.memory_space<vmem>>, vector<2x32xf32>,
    %149 = vector.extract_strided_slice %5 {offsets = [14, 0], sizes = [2, 128], strides = [1, 1]} : vector<16x128xf32> to vector<2x128xf32>
    %cst_31 = arith.constant dense<0.000000e+00> : vector<2x128xf32>
    %150 = tpu.matmul %147, %6, %cst_31 {dimension_numbers = #tpu.dot_dimension_numbers<[1], [0], [0], [1], [0, 0, 1, 1], [], []>} : vector<2x32xf32>, vector<32x128xf32>, vector<2x128xf32> -> vector<2x128xf32>
    %151 = arith.addf %149, %150 : vector<2x128xf32>
    %152 = vector.extract_strided_slice %151 {offsets = [0, 0], sizes = [2, 96], strides = [1, 1]} : vector<2x128xf32> to vector<2x96xf32>
    %153 = arith.negf %152 : vector<2x96xf32>
    %154 = math.exp %153 : vector<2x96xf32>
    %cst_32 = arith.constant 1.000000e+00 : f32
    %155 = vector.broadcast %cst_32 : f32 to vector<2x96xf32>
    %156 = arith.addf %155, %154 : vector<2x96xf32>
    %157 = arith.divf %155, %156 : vector<2x96xf32>
    %158 = vector.extract_strided_slice %157 {offsets = [0, 0], sizes = [2, 32], strides = [1, 1]} : vector<2x96xf32> to vector<2x32xf32>
    %159 = vector.extract_strided_slice %157 {offsets = [0, 32], sizes = [2, 32], strides = [1, 1]} : vector<2x96xf32> to vector<2x32xf32>
    %160 = vector.extract_strided_slice %157 {offsets = [0, 64], sizes = [2, 32], strides = [1, 1]} : vector<2x96xf32> to vector<2x32xf32>
    %161 = vector.extract_strided_slice %151 {offsets = [0, 96], sizes = [2, 32], strides = [1, 1]} : vector<2x128xf32> to vector<2x32xf32>
    %162 = math.tanh %161 : vector<2x32xf32>
    %163 = arith.mulf %159, %145 : vector<2x32xf32>
    %164 = arith.mulf %158, %162 : vector<2x32xf32>
    %165 = arith.addf %163, %164 : vector<2x32xf32>
    %166 = math.tanh %165 : vector<2x32xf32>
    %167 = arith.mulf %160, %166 : vector<2x32xf32>
    %c14 = arith.constant 14 : index
    %c0_33 = arith.constant 0 : index
    %168 = vector.load %arg7[%c14, %c0_33] : memref<16x32xf32, #tpu.memory_space<vmem>>, vector<2x32xf32>
    tpu.vector_store %arg7[%c14, %c0_33], %167 {strides = array<i32>} : memref<16x32xf32, #tpu.memory_space<vmem>>, vector<2x32xf32>,
    %c0_34 = arith.constant 0 : index
    %c0_35 = arith.constant 0 : index
    %169 = vector.load %arg7[%c0_34, %c0_35] : memref<16x32xf32, #tpu.memory_space<vmem>>, vector<16x32xf32>
    %cst_36 = arith.constant 0.000000e+00 : f32
    %170 = vector.broadcast %cst_36 : f32 to vector<16x32xf32>
    %171 = arith.maximumf %169, %170 : vector<16x32xf32>
    %c0_37 = arith.constant 0 : index
    %c0_38 = arith.constant 0 : index
    %172 = vector.load %arg4[%c0_37, %c0_38] : memref<32x32xf32, #tpu.memory_space<vmem>>, vector<32x32xf32>
    %cst_39 = arith.constant dense<0.000000e+00> : vector<16x32xf32>
    %173 = tpu.matmul %171, %172, %cst_39 {dimension_numbers = #tpu.dot_dimension_numbers<[1], [0], [0], [1], [0, 0, 1, 1], [], []>} : vector<16x32xf32>, vector<32x32xf32>, vector<16x32xf32> -> vector<16x32xf32>
    %c0_40 = arith.constant 0 : index
    %c0_41 = arith.constant 0 : index
    %174 = vector.load %arg5[%c0_40, %c0_41] : memref<1x32xf32, #tpu.memory_space<vmem>>, vector<1x32xf32>
    %175 = vector.broadcast %174 : vector<1x32xf32> to vector<16x32xf32>
    %176 = arith.addf %173, %175 : vector<16x32xf32>
    %cst_42 = arith.constant dense<0xFF800000> : vector<16xf32>
    %177 = vector.multi_reduction <maximumf>, %176, %cst_42 [1] : vector<16x32xf32> to vector<16xf32>
    %178 = vector.shape_cast %177 : vector<16xf32> to vector<16x1xf32>
    %179 = vector.broadcast %178 : vector<16x1xf32> to vector<16x32xf32>
    %180 = arith.subf %176, %179 : vector<16x32xf32>
    %181 = math.exp %180 : vector<16x32xf32>
    %cst_43 = arith.constant dense<0.000000e+00> : vector<16xf32>
    %182 = vector.multi_reduction <add>, %181, %cst_43 [1] : vector<16x32xf32> to vector<16xf32>
    %183 = vector.shape_cast %182 : vector<16xf32> to vector<16x1xf32>
    %184 = tpu.reciprocal %183 : vector<16x1xf32> -> vector<16x1xf32>
    %185 = vector.broadcast %184 : vector<16x1xf32> to vector<16x32xf32>
    %186 = arith.mulf %181, %185 : vector<16x32xf32>
    %c0_44 = arith.constant 0 : index
    %c0_45 = arith.constant 0 : index
    %187 = vector.load %arg6[%c0_44, %c0_45] : memref<16x32xf32, #tpu.memory_space<vmem>>, vector<16x32xf32>
    tpu.vector_store %arg6[%c0_44, %c0_45], %186 {strides = array<i32>} : memref<16x32xf32, #tpu.memory_space<vmem>>, vector<16x32xf32>,
    return
  }
}

</mosaic_0001>

<bundles_post_ra>
// kernel: tpu_custom_call.1
= control target key start
LH: loop header
LB: loop body
LE: loop exit
PB: predicated region body
PF: predicated region fallthrough
CT: control target
= control target key end

     0   :  { %11 = vsyncpa [#allocation4], 0  ;;  %s1257_s0 = inlined_call_operand.hbm [shape: f32[16,16], index: 0, kind: input, shape index: {}]   ;;  %s1258_s1 = inlined_call_operand.hbm [shape: f32[16,128], index: 1, kind: input, shape index: {}]   ;;  %s1259_s2 = inlined_call_operand.hbm [shape: f32[32,128], index: 2, kind: input, shape index: {}]   ;;  %s1260_s3 = inlined_call_operand.vmem [shape: f32[1,128], index: 3, kind: input, shape index: {}]   ;;  %s1261_s4 = inlined_call_operand.hbm [shape: f32[32,32], index: 4, kind: input, shape index: {}]   ;;  %s1262_s5 = inlined_call_operand.vmem [shape: f32[1,32], index: 5, kind: input, shape index: {}]   ;;  %s1263_s6 = inlined_call_operand.hbm [shape: f32[16,32], index: 6, kind: output, shape index: {}]  }
   0x1   :  { %12 = vsyncpa [#allocation7], 0 }
   0x2   :  { %13 = vsyncpa [#allocation10], 0 }
   0x3   :  { %14 = vsyncpa [#allocation5], 0  ;;  %s32_s23 = sshll.u32 %s1258_s1, 4  ;;  %s1052_s24 = smov [#allocation6]   ;;  %s33_s23 = int_to_ptr.hbm [resolvable:$true] %s32_s23 }
   0x4   :  { %s34_s25 = sshll.u32 %s1052_s24, 4  ;;  %s19_s28 = sshll.u32 %s1257_s0, 4  ;;  %s35_s25 = int_to_ptr.vmem [resolvable:$true] %s34_s25  ;;  %s20_s28 = int_to_ptr.hbm [resolvable:$true] %s19_s28 }
   0x5   :  { %s1053_s29 = smov 128   ;;  %s1054_s30 = smov 8  }
   0x6   :  { %40 = dma.hbm_to_vmem [thread:$0]  %s33_s23, 256, %s35_s25, [#allocation7], %s1053_s29, %s1053_s29, %s1054_s30  }
   0x7   :  { %s1055_s7 = smov [#allocation3]   ;;  %s45_s1 = sshll.u32 %s1259_s2, 4  ;;  %s46_s1 = int_to_ptr.hbm [resolvable:$true] %s45_s1 }
   0x8   :  { %s21_s8 = sshll.u32 %s1055_s7, 4  ;;  %s60_s12 = sshll.u32 %s1261_s4, 4  ;;  %s22_s8 = int_to_ptr.vmem [resolvable:$true] %s21_s8  ;;  %s61_s12 = int_to_ptr.hbm [resolvable:$true] %s60_s12 }
   0x9   :  { %27 = dma.hbm_to_vmem [thread:$0]  %s20_s28, 256, %s22_s8, [#allocation4], %s1053_s29, %s1053_s29, %s1054_s30  }
   0xa   :  { %s1056_s13 = smov [#allocation8]   ;;  %s1057_s15 = smov [#allocation9]  }
   0xb   :  { %s47_s14 = sshll.u32 %s1056_s13, 4  ;;  %s62_s2 = sshll.u32 %s1057_s15, 4  ;;  %s48_s14 = int_to_ptr.vmem [resolvable:$true] %s47_s14  ;;  %s63_s2 = int_to_ptr.vmem [resolvable:$true] %s62_s2 }
   0xc   :  { %53 = dma.hbm_to_vmem [thread:$0]  %s46_s1, 512, %s48_s14, [#allocation7], %s1053_s29, %s1053_s29, %s1054_s30  }
   0xd   :  { %68 = dma.hbm_to_vmem [thread:$0]  %s61_s12, 512, %s63_s2, [#allocation10], %s1053_s29, %s1053_s29, %s1054_s30  }
   0xe   :  { %1044 = dma.done.wait [#allocation4], 256  }
   0xf   :  { %1045 = vsyncadd [#allocation4], 4294967040 }
  0x10   :  { %1046 = dma.done.wait [#allocation7], 768  }
  0x11   :  { %1047 = vsyncadd [#allocation7], 4294966528 }
  0x12   :  { %1048 = dma.done.wait [#allocation10], 512  }
  0x13   :  { %1049 = vsyncadd [#allocation10], 4294966784  ;;  %v1121_v0 = vld [vmem:[#allocation8 + $0x18] sm:$0xff]  ;;  %v1123_v2 = vld [vmem:[#allocation8 + $0x10] sm:$0xff]  ;;  %vm95_vm0 = vcmask 130048   ;;  %v1058_v7 = vmov 0.0  }
  0x14   :  { %v90_v1 = vld [vmem:[#allocation6 + $0x8] sm:$0xff]  ;;  %145 = vmatpush.msra.mxu1 %v1121_v0  ;;  %v89_v3 = vld [vmem:[#allocation6] sm:$0xff]  ;;  %v87_v4 = vld [vmem:[#allocation3] sm:$0xff]  ;;  %211 = vmatpush.msra.mxu3 %v1121_v0  ;;  %s1059_s17 = smov 32   ;;  %vm195_vm5 = vcmask 254976   ;;  %vm129_vm6 = vcmask 261120  }
  0x15   :  { %116 = vmatpush.msra.mxu0 %v90_v1  ;;  %v1126_v5 = vld [vmem:[#allocation8 + $0x8] sm:$0xff]  ;;  %436 = vmatpush.msra.mxu2 %v1121_v0  ;;  %v1132_v6 = vld [vmem:[#allocation8] sm:$0xff]  ;;  %v1161_v8 = vld [vmem:[%s1260_s3] ss:$0 sm:$0xff]  ;;  %s1060_s3 = smov 64   ;;  %s806_s23 = sshll.u32 %s1263_s6, 4  ;;  %s807_s23 = int_to_ptr.hbm [resolvable:$true] %s806_s23 }
  0x16   :  { %146 = vmatpush.msra.mxu1 %v1123_v2  ;;  %212 = vmatpush.msra.mxu3 %v1123_v2 }
  0x17   :  { %117 = vmatpush.msra.mxu0 %v89_v3  ;;  %437 = vmatpush.msra.mxu2 %v1123_v2 }
  0x18   :  { %821 = vmatmul.msk.f32.vlgmr.msra.gmra.mxu0 %vm95_vm0, %v87_v4  ;;  %147 = vmatpush.msra.mxu1 %v1126_v5 }
  0x19   :  { %213 = vmatpush.msra.mxu3 %v1126_v5  ;;  %578 = vmatpush.msrb.mxu0 %v1121_v0 }
  0x1a   :  { %148 = vmatpush.msra.mxu1 %v1132_v6  ;;  %438 = vmatpush.msra.mxu2 %v1126_v5 }
  0x1b   :  { %149 = vmatmul.f32.vlgmr.msra.gmra.mxu1 %v1058_v7  ;;  %214 = vmatpush.msra.mxu3 %v1132_v6 }
  0x1c   :  { %361 = vmatpush.msrb.mxu1 %v1121_v0  ;;  %439 = vmatpush.msra.mxu2 %v1132_v6 }
  0x1d   :  { %286 = vmatpush.msrb.mxu3 %v1121_v0  ;;  %579 = vmatpush.msrb.mxu0 %v1123_v2 }
  0x1e   :  { %362 = vmatpush.msrb.mxu1 %v1123_v2 }
  0x1f   :  { %287 = vmatpush.msrb.mxu3 %v1123_v2  ;;  %580 = vmatpush.msrb.mxu0 %v1126_v5 }
  0x20   :  { %363 = vmatpush.msrb.mxu1 %v1126_v5 }
  0x21   :  { %288 = vmatpush.msrb.mxu3 %v1126_v5  ;;  %581 = vmatpush.msrb.mxu0 %v1132_v6 }
  0x22   :  { %364 = vmatpush.msrb.mxu1 %v1132_v6 }
  0x23   :  { %289 = vmatpush.msrb.mxu3 %v1132_v6 }
  0x24   :  { %652 = vmatpush.msra.mxu1 %v1121_v0 }
  0x26   :  { %653 = vmatpush.msra.mxu1 %v1123_v2 }
  0x28   :  { %654 = vmatpush.msra.mxu1 %v1126_v5 }
  0x2a   :  { %655 = vmatpush.msra.mxu1 %v1132_v6 }
  0x95   :  { %v119_v9 = vpop.f32.mrf.mxu0 }
  0x96   :  { %v1164_v10 = vadd.f32 %v1161_v8, %v119_v9 }
  0x98   :  { %v150_v11 = vpop.f32.mrf.mxu1 }
  0x99   :  { %v153_v12 = vadd.f32 %v150_v11, %v1164_v10 }
  0x9b   :  { %852 = vtanh.f32 %v153_v12  ;;  %v823_v14 = vmul.f32 -1.442695, %v153_v12 }
  0x9d   :  { %854 = vpow2.f32 %v823_v14 }
  0xa1   :  { %v853_v13 = vpop.eup %852 }
  0xa2   :  { %176 = vrot.lane.b32.xlu0 %v853_v13, %s1059_s17 }
  0xa3   :  { %v855_v15 = vpop.eup %854 }
  0xa4   :  { %v157_v16 = vadd.f32 1.0, %v855_v15 }
  0xa6   :  { %856 = vrcp.f32 %v157_v16  ;;  %v169_v22 = vand.u32 2147483648, %v157_v16  ;;  %vm163_vm2 = vweird.f32 %v157_v16  ;;  %v167_v23 = vand.u32 2147483647, %v157_v16 }
  0xa8   :  { %v170_v25 = vor.u32 1.1754944e-38, %v169_v22  ;;  %vm168_vm4 = vcmp.eq.f32.partialorder %v167_v23, 8.507059e+37 }
  0xac   :  { %v857_v17 = vpop.eup %856 }
  0xad   :  { %v159_v18 = vmul.f32 %v857_v17, %v157_v16  ;;  %vm164_vm1 = vweird.f32 %v857_v17 }
  0xae   :  { %vm165_vm3 = vmor %vm163_vm2, %vm164_vm1 }
  0xaf   :  { %v160_v19 = vsub.f32 1.0, %v159_v18 }
  0xb1   :  { %v161_v20 = vmul.f32 %v857_v17, %v160_v19 }
  0xb3   :  { %v162_v21 = vadd.f32 %v857_v17, %v161_v20 }
  0xb5   :  { %v166_v24 = vsel %vm165_vm3, %v857_v17, %v162_v21 }
  0xb6   :  { %v171_v27 = vsel %vm168_vm4, %v170_v25, %v166_v24 }
  0xb7   :  { %v174_v29 = vmul.f32 0.0, %v171_v27 }
 0x114   :  { %v177_v26 = vpop.permute.xlu0 %176 }
 0x115   :  { %v179_v28 = vmul.f32 %v177_v26, %v171_v27 }
 0x117   :  { %181 = vrot.lane.b32.xlu0 %v179_v28, %s1059_s17 }
 0x189   :  { %v182_v30 = vpop.permute.xlu0 %181 }
 0x18a   :  { %v184_v31 = vadd.f32 %v182_v30, %v174_v29 }
 0x18c   :  { %858 = vtanh.f32 %v184_v31  ;;  %v244_v55 = vrot.slane %v184_v31, 6 }
 0x192   :  { %v859_v32 = vpop.eup %858 }
 0x193   :  { %187 = vrot.lane.b32.xlu1 %v859_v32, %s1059_s17 }
 0x205   :  { %v188_v33 = vpop.permute.xlu1 %187 }
 0x206   :  { %v190_v34 = vmul.f32 %v188_v33, %v171_v27 }
 0x208   :  { %192 = vrot.lane.b32.xlu1 %v190_v34, %s1060_s3 }
 0x27a   :  { %v193_v35 = vpop.permute.xlu1 %192 }
 0x27b   :  { %196 = vst.msk [vmem:[#allocation2] sm:$0x3] %vm195_vm5, %v193_v35  ;;  %824 = vmatmul.msk.f32.vlgmr.msra.gmra.mxu3 %vm129_vm6, %v193_v35 }
 0x27c   :  { %504 = vmatpush.msra.mxu3 %v1121_v0 }
 0x27e   :  { %505 = vmatpush.msra.mxu3 %v1123_v2 }
 0x280   :  { %506 = vmatpush.msra.mxu3 %v1126_v5 }
 0x282   :  { %507 = vmatpush.msra.mxu3 %v1132_v6 }
 0x2fe   :  { %v216_v36 = vpop.f32.mrf.mxu3 }
 0x2ff   :  { %v220_v37 = vrot.slane %v216_v36, 6 }
 0x301   :  { %v222_v38 = vadd.f32 %v220_v37, %v1164_v10 }
 0x303   :  { %860 = vtanh.f32 %v222_v38  ;;  %v825_v40 = vmul.f32 -1.442695, %v222_v38 }
 0x305   :  { %862 = vpow2.f32 %v825_v40 }
 0x309   :  { %v861_v39 = vpop.eup %860 }
 0x30a   :  { %248 = vrot.lane.b32.xlu2 %v861_v39, %s1059_s17 }
 0x30b   :  { %v863_v41 = vpop.eup %862 }
 0x30c   :  { %v226_v42 = vadd.f32 1.0, %v863_v41 }
 0x30e   :  { %864 = vrcp.f32 %v226_v42  ;;  %v238_v48 = vand.u32 2147483648, %v226_v42  ;;  %vm232_vm8 = vweird.f32 %v226_v42  ;;  %v236_v49 = vand.u32 2147483647, %v226_v42 }
 0x310   :  { %v239_v51 = vor.u32 1.1754944e-38, %v238_v48  ;;  %vm237_vm10 = vcmp.eq.f32.partialorder %v236_v49, 8.507059e+37 }
 0x314   :  { %v865_v43 = vpop.eup %864 }
 0x315   :  { %v228_v44 = vmul.f32 %v865_v43, %v226_v42  ;;  %vm233_vm7 = vweird.f32 %v865_v43 }
 0x316   :  { %vm234_vm9 = vmor %vm232_vm8, %vm233_vm7 }
 0x317   :  { %v229_v45 = vsub.f32 1.0, %v228_v44 }
 0x319   :  { %v230_v46 = vmul.f32 %v865_v43, %v229_v45 }
 0x31b   :  { %v231_v47 = vadd.f32 %v865_v43, %v230_v46 }
 0x31d   :  { %v235_v50 = vsel %vm234_vm9, %v865_v43, %v231_v47 }
 0x31e   :  { %v240_v53 = vsel %vm237_vm10, %v239_v51, %v235_v50 }
 0x31f   :  { %v246_v56 = vmul.f32 %v244_v55, %v240_v53 }
 0x364   :  { %v249_v52 = vpop.permute.xlu2 %248 }
 0x365   :  { %v251_v54 = vmul.f32 %v249_v52, %v240_v53 }
 0x367   :  { %253 = vrot.lane.b32.xlu2 %v251_v54, %s1059_s17 }
 0x3c1   :  { %v254_v57 = vpop.permute.xlu2 %253 }
 0x3c2   :  { %v256_v58 = vadd.f32 %v254_v57, %v246_v56  ;;  %v88_v56 = vld [vmem:[#allocation3 + $0x8] sm:$0xff] }
 0x3c3   :  { %822 = vmatmul.msk.f32.gmra.mxu0 %vm95_vm0, %v88_v56 }
 0x3c4   :  { %866 = vtanh.f32 %v256_v58  ;;  %v319_v21 = vrot.slane %v256_v58, 6 }
 0x3ca   :  { %v867_v59 = vpop.eup %866 }
 0x3cb   :  { %259 = vrot.lane.b32.xlu0 %v867_v59, %s1059_s17 }
 0x43d   :  { %v260_v60 = vpop.permute.xlu0 %259 }
 0x43e   :  { %v1181_v61 = vmul.f32 %v260_v60, %v240_v53 }
 0x440   :  { %v269_v62 = vrot.slane %v1181_v61, 2  ;;  %v122_v58 = vpop.f32.mrf.mxu0 }
 0x441   :  { %v1206_v59 = vadd.f32 %v1161_v8, %v122_v58 }
 0x442   :  { %270 = vrot.lane.b32.xlu1 %v269_v62, %s1060_s3 }
 0x4b4   :  { %v271_v63 = vpop.permute.xlu1 %270 }
 0x4b5   :  { %826 = vmatmul.msk.f32.vlgmr.msrb.gmra.mxu3 %vm129_vm6, %v271_v63 }
 0x538   :  { %v291_v0 = vpop.f32.mrf.mxu3 }
 0x539   :  { %v295_v1 = vrot.slane %v291_v0, 4 }
 0x53b   :  { %v297_v2 = vadd.f32 %v295_v1, %v1164_v10 }
 0x53d   :  { %868 = vtanh.f32 %v297_v2  ;;  %v827_v4 = vmul.f32 -1.442695, %v297_v2 }
 0x53f   :  { %870 = vpow2.f32 %v827_v4 }
 0x543   :  { %v869_v3 = vpop.eup %868 }
 0x544   :  { %323 = vrot.lane.b32.xlu2 %v869_v3, %s1059_s17 }
 0x545   :  { %v871_v5 = vpop.eup %870 }
 0x546   :  { %v301_v6 = vadd.f32 1.0, %v871_v5 }
 0x548   :  { %872 = vrcp.f32 %v301_v6  ;;  %v313_v14 = vand.u32 2147483648, %v301_v6  ;;  %vm307_vm12 = vweird.f32 %v301_v6  ;;  %v311_v15 = vand.u32 2147483647, %v301_v6 }
 0x54a   :  { %v314_v17 = vor.u32 1.1754944e-38, %v313_v14  ;;  %vm312_vm14 = vcmp.eq.f32.partialorder %v311_v15, 8.507059e+37 }
 0x54e   :  { %v873_v7 = vpop.eup %872 }
 0x54f   :  { %v303_v9 = vmul.f32 %v873_v7, %v301_v6  ;;  %vm308_vm11 = vweird.f32 %v873_v7 }
 0x550   :  { %vm309_vm13 = vmor %vm307_vm12, %vm308_vm11 }
 0x551   :  { %v304_v11 = vsub.f32 1.0, %v303_v9 }
 0x553   :  { %v305_v12 = vmul.f32 %v873_v7, %v304_v11 }
 0x555   :  { %v306_v13 = vadd.f32 %v873_v7, %v305_v12 }
 0x557   :  { %v310_v16 = vsel %vm309_vm13, %v873_v7, %v306_v13 }
 0x558   :  { %v315_v19 = vsel %vm312_vm14, %v314_v17, %v310_v16 }
 0x559   :  { %v321_v22 = vmul.f32 %v319_v21, %v315_v19 }
 0x59e   :  { %v324_v18 = vpop.permute.xlu2 %323 }
 0x59f   :  { %v326_v20 = vmul.f32 %v324_v18, %v315_v19 }
 0x5a1   :  { %328 = vrot.lane.b32.xlu0 %v326_v20, %s1059_s17 }
 0x613   :  { %v329_v23 = vpop.permute.xlu0 %328 }
 0x614   :  { %v331_v24 = vadd.f32 %v329_v23, %v321_v22 }
 0x616   :  { %874 = vtanh.f32 %v331_v24  ;;  %v394_v48 = vrot.slane %v331_v24, 6 }
 0x61c   :  { %v875_v25 = vpop.eup %874 }
 0x61d   :  { %334 = vrot.lane.b32.xlu1 %v875_v25, %s1059_s17 }
 0x68f   :  { %v335_v26 = vpop.permute.xlu1 %334 }
 0x690   :  { %v1190_v27 = vmul.f32 %v335_v26, %v315_v19 }
 0x692   :  { %v344_v28 = vrot.slane %v1190_v27, 4 }
 0x694   :  { %345 = vrot.lane.b32.xlu2 %v344_v28, %s1060_s3 }
 0x6ee   :  { %v346_v29 = vpop.permute.xlu2 %345 }
 0x6ef   :  { %828 = vmatmul.msk.f32.vlgmr.msrb.gmra.mxu1 %vm129_vm6, %v346_v29 }
 0x76c   :  { %v366_v30 = vpop.f32.mrf.mxu1 }
 0x76d   :  { %v370_v31 = vrot.slane %v366_v30, 2 }
 0x76f   :  { %v372_v32 = vadd.f32 %v370_v31, %v1164_v10 }
 0x771   :  { %876 = vtanh.f32 %v372_v32  ;;  %v829_v34 = vmul.f32 -1.442695, %v372_v32 }
 0x773   :  { %878 = vpow2.f32 %v829_v34 }
 0x777   :  { %v877_v33 = vpop.eup %876 }
 0x778   :  { %398 = vrot.lane.b32.xlu0 %v877_v33, %s1059_s17 }
 0x779   :  { %v879_v35 = vpop.eup %878 }
 0x77a   :  { %v376_v36 = vadd.f32 1.0, %v879_v35 }
 0x77c   :  { %880 = vrcp.f32 %v376_v36  ;;  %v388_v42 = vand.u32 2147483648, %v376_v36  ;;  %vm382_vm1 = vweird.f32 %v376_v36  ;;  %v386_v43 = vand.u32 2147483647, %v376_v36 }
 0x77e   :  { %v389_v44 = vor.u32 1.1754944e-38, %v388_v42  ;;  %vm387_vm3 = vcmp.eq.f32.partialorder %v386_v43, 8.507059e+37 }
 0x782   :  { %v881_v37 = vpop.eup %880 }
 0x783   :  { %v378_v38 = vmul.f32 %v881_v37, %v376_v36  ;;  %vm383_vm15 = vweird.f32 %v881_v37 }
 0x784   :  { %vm384_vm2 = vmor %vm382_vm1, %vm383_vm15 }
 0x785   :  { %v379_v39 = vsub.f32 1.0, %v378_v38 }
 0x787   :  { %v380_v40 = vmul.f32 %v881_v37, %v379_v39 }
 0x789   :  { %v381_v41 = vadd.f32 %v881_v37, %v380_v40 }
 0x78b   :  { %v385_v10 = vsel %vm384_vm2, %v881_v37, %v381_v41 }
 0x78c   :  { %v390_v46 = vsel %vm387_vm3, %v389_v44, %v385_v10 }
 0x78d   :  { %v396_v49 = vmul.f32 %v394_v48, %v390_v46 }
 0x7ea   :  { %v399_v45 = vpop.permute.xlu0 %398 }
 0x7eb   :  { %v401_v47 = vmul.f32 %v399_v45, %v390_v46 }
 0x7ed   :  { %403 = vrot.lane.b32.xlu1 %v401_v47, %s1059_s17 }
 0x85f   :  { %v404_v50 = vpop.permute.xlu1 %403 }
 0x860   :  { %v406_v51 = vadd.f32 %v404_v50, %v396_v49 }
 0x862   :  { %882 = vtanh.f32 %v406_v51  ;;  %v466_v16 = vrot.slane %v406_v51, 6 }
 0x868   :  { %v883_v52 = vpop.eup %882 }
 0x869   :  { %409 = vrot.lane.b32.xlu2 %v883_v52, %s1059_s17 }
 0x8c3   :  { %v410_v53 = vpop.permute.xlu2 %409 }
 0x8c4   :  { %v1199_v54 = vmul.f32 %v410_v53, %v390_v46 }
 0x8c6   :  { %v419_v55 = vrot.slane %v1199_v54, 6 }
 0x8c8   :  { %420 = vrot.lane.b32.xlu0 %v419_v55, %s1060_s3 }
 0x93a   :  { %v421_v57 = vpop.permute.xlu0 %420 }
 0x93b   :  { %830 = vmatmul.msk.f32.vlgmr.msra.gmra.mxu2 %vm129_vm6, %v421_v57 }
 0x9be   :  { %v441_v60 = vpop.f32.mrf.mxu2 }
 0x9bf   :  { %v444_v62 = vadd.f32 %v441_v60, %v1206_v59 }
 0x9c1   :  { %884 = vtanh.f32 %v444_v62  ;;  %v831_v0 = vmul.f32 -1.442695, %v444_v62 }
 0x9c3   :  { %886 = vpow2.f32 %v831_v0 }
 0x9c7   :  { %v885_v63 = vpop.eup %884 }
 0x9c8   :  { %470 = vrot.lane.b32.xlu1 %v885_v63, %s1059_s17 }
 0x9c9   :  { %v887_v1 = vpop.eup %886 }
 0x9ca   :  { %v448_v2 = vadd.f32 1.0, %v887_v1 }
 0x9cc   :  { %888 = vrcp.f32 %v448_v2  ;;  %v460_v8 = vand.u32 2147483648, %v448_v2  ;;  %vm454_vm4 = vweird.f32 %v448_v2  ;;  %v458_v9 = vand.u32 2147483647, %v448_v2 }
 0x9ce   :  { %v461_v12 = vor.u32 1.1754944e-38, %v460_v8  ;;  %vm459_vm8 = vcmp.eq.f32.partialorder %v458_v9, 8.507059e+37 }
 0x9d2   :  { %v889_v3 = vpop.eup %888 }
 0x9d3   :  { %v450_v4 = vmul.f32 %v889_v3, %v448_v2  ;;  %vm455_vm0 = vweird.f32 %v889_v3 }
 0x9d4   :  { %vm456_vm7 = vmor %vm454_vm4, %vm455_vm0  ;;  %vm267_vm4 = vcmask 257026  }
 0x9d5   :  { %v451_v5 = vsub.f32 1.0, %v450_v4 }
 0x9d7   :  { %v452_v6 = vmul.f32 %v889_v3, %v451_v5 }
 0x9d9   :  { %v453_v7 = vadd.f32 %v889_v3, %v452_v6 }
 0x9db   :  { %v457_v11 = vsel %vm456_vm7, %v889_v3, %v453_v7  ;;  %vm342_vm7 = vcmask 259076  }
 0x9dc   :  { %v462_v14 = vsel %vm459_vm8, %v461_v12, %v457_v11  ;;  %vm417_vm8 = vcmask 261126  }
 0x9dd   :  { %v468_v17 = vmul.f32 %v466_v16, %v462_v14 }
 0xa3a   :  { %v471_v13 = vpop.permute.xlu1 %470 }
 0xa3b   :  { %v473_v15 = vmul.f32 %v471_v13, %v462_v14 }
 0xa3d   :  { %475 = vrot.lane.b32.xlu2 %v473_v15, %s1059_s17 }
 0xa97   :  { %v476_v18 = vpop.permute.xlu2 %475 }
 0xa98   :  { %v478_v19 = vadd.f32 %v476_v18, %v468_v17 }
 0xa9a   :  { %890 = vtanh.f32 %v478_v19  ;;  %v537_v10 = vrot.slane %v478_v19, 6 }
 0xaa0   :  { %v891_v20 = vpop.eup %890 }
 0xaa1   :  { %481 = vrot.lane.b32.xlu0 %v891_v20, %s1059_s17 }
 0xb13   :  { %v482_v21 = vpop.permute.xlu0 %481 }
 0xb14   :  { %v484_v22 = vmul.f32 %v482_v21, %v462_v14 }
 0xb16   :  { %486 = vrot.lane.b32.xlu1 %v484_v22, %s1060_s3 }
 0xb88   :  { %v487_v23 = vpop.permute.xlu1 %486 }
 0xb89   :  { %489 = vst.msk [vmem:[#allocation2 + $0x8] sm:$0x3] %vm195_vm5, %v487_v23  ;;  %832 = vmatmul.msk.f32.vlgmr.msra.gmra.mxu3 %vm129_vm6, %v487_v23 }
 0xc0c   :  { %v509_v24 = vpop.f32.mrf.mxu3 }
 0xc0d   :  { %v513_v25 = vrot.slane %v509_v24, 6 }
 0xc0f   :  { %v515_v26 = vadd.f32 %v513_v25, %v1206_v59 }
 0xc11   :  { %892 = vtanh.f32 %v515_v26  ;;  %v833_v29 = vmul.f32 -1.442695, %v515_v26 }
 0xc13   :  { %894 = vpow2.f32 %v833_v29 }
 0xc17   :  { %v893_v28 = vpop.eup %892 }
 0xc18   :  { %541 = vrot.lane.b32.xlu2 %v893_v28, %s1059_s17 }
 0xc19   :  { %v895_v30 = vpop.eup %894 }
 0xc1a   :  { %v519_v31 = vadd.f32 1.0, %v895_v30 }
 0xc1c   :  { %896 = vrcp.f32 %v519_v31  ;;  %v531_v37 = vand.u32 2147483648, %v519_v31  ;;  %vm525_vm9 = vweird.f32 %v519_v31  ;;  %v529_v38 = vand.u32 2147483647, %v519_v31 }
 0xc1e   :  { %v532_v40 = vor.u32 1.1754944e-38, %v531_v37  ;;  %vm530_vm11 = vcmp.eq.f32.partialorder %v529_v38, 8.507059e+37 }
 0xc22   :  { %v897_v32 = vpop.eup %896 }
 0xc23   :  { %v521_v33 = vmul.f32 %v897_v32, %v519_v31  ;;  %vm526_vm5 = vweird.f32 %v897_v32 }
 0xc24   :  { %vm527_vm10 = vmor %vm525_vm9, %vm526_vm5 }
 0xc25   :  { %v522_v34 = vsub.f32 1.0, %v521_v33 }
 0xc27   :  { %v523_v35 = vmul.f32 %v897_v32, %v522_v34 }
 0xc29   :  { %v524_v36 = vadd.f32 %v897_v32, %v523_v35 }
 0xc2b   :  { %v528_v39 = vsel %vm527_vm10, %v897_v32, %v524_v36 }
 0xc2c   :  { %v533_v42 = vsel %vm530_vm11, %v532_v40, %v528_v39 }
 0xc2d   :  { %v539_v44 = vmul.f32 %v537_v10, %v533_v42 }
 0xc72   :  { %v542_v41 = vpop.permute.xlu2 %541 }
 0xc73   :  { %v544_v43 = vmul.f32 %v542_v41, %v533_v42 }
 0xc75   :  { %546 = vrot.lane.b32.xlu0 %v544_v43, %s1059_s17 }
 0xce7   :  { %v547_v45 = vpop.permute.xlu0 %546 }
 0xce8   :  { %v549_v46 = vadd.f32 %v547_v45, %v539_v44 }
 0xcea   :  { %898 = vtanh.f32 %v549_v46  ;;  %v611_v11 = vrot.slane %v549_v46, 6  ;;  %v715_v46 = vld [vmem:[#allocation9 + $0x10] sm:$0xff] }
 0xcf0   :  { %v899_v47 = vpop.eup %898 }
 0xcf1   :  { %552 = vrot.lane.b32.xlu1 %v899_v47, %s1059_s17  ;;  %v714_v47 = vld [vmem:[#allocation9 + $0x8] sm:$0xff] }
 0xd63   :  { %v553_v48 = vpop.permute.xlu1 %552 }
 0xd64   :  { %v555_v49 = vmul.f32 %v553_v48, %v533_v42  ;;  %v713_v48 = vld [vmem:[#allocation9] sm:$0xff] }
 0xd66   :  { %v561_v50 = vrot.slane %v555_v49, 2 }
 0xd68   :  { %562 = vrot.lane.b32.xlu2 %v561_v50, %s1060_s3 }
 0xdc2   :  { %v563_v51 = vpop.permute.xlu2 %562 }
 0xdc3   :  { %834 = vmatmul.msk.f32.vlgmr.msrb.gmra.mxu0 %vm129_vm6, %v563_v51 }
 0xe40   :  { %v583_v52 = vpop.f32.mrf.mxu0 }
 0xe41   :  { %v587_v53 = vrot.slane %v583_v52, 4 }
 0xe43   :  { %v589_v55 = vadd.f32 %v587_v53, %v1206_v59 }
 0xe45   :  { %900 = vtanh.f32 %v589_v55  ;;  %v835_v57 = vmul.f32 -1.442695, %v589_v55 }
 0xe47   :  { %902 = vpow2.f32 %v835_v57  ;;  %v851_v57 = vld [vmem:[%s1262_s5] ss:$0 sm:$0xff]  ;;  %s1061_s5 = smov [#allocation11]  }
 0xe48   :  { %s804_s20 = sshll.u32 %s1061_s5, 4  ;;  %s805_s20 = int_to_ptr.vmem [resolvable:$true] %s804_s20 }
 0xe4b   :  { %v901_v56 = vpop.eup %900 }
 0xe4c   :  { %615 = vrot.lane.b32.xlu0 %v901_v56, %s1059_s17 }
 0xe4d   :  { %v903_v58 = vpop.eup %902 }
 0xe4e   :  { %v593_v60 = vadd.f32 1.0, %v903_v58 }
 0xe50   :  { %904 = vrcp.f32 %v593_v60  ;;  %v605_v3 = vand.u32 2147483648, %v593_v60  ;;  %vm599_vm13 = vweird.f32 %v593_v60  ;;  %v603_v4 = vand.u32 2147483647, %v593_v60 }
 0xe52   :  { %v606_v6 = vor.u32 1.1754944e-38, %v605_v3  ;;  %vm604_vm15 = vcmp.eq.f32.partialorder %v603_v4, 8.507059e+37 }
 0xe56   :  { %v905_v62 = vpop.eup %904 }
 0xe57   :  { %v595_v63 = vmul.f32 %v905_v62, %v593_v60  ;;  %vm600_vm12 = vweird.f32 %v905_v62 }
 0xe58   :  { %vm601_vm14 = vmor %vm599_vm13, %vm600_vm12 }
 0xe59   :  { %v596_v0 = vsub.f32 1.0, %v595_v63 }
 0xe5b   :  { %v597_v1 = vmul.f32 %v905_v62, %v596_v0 }
 0xe5d   :  { %v598_v2 = vadd.f32 %v905_v62, %v597_v1 }
 0xe5f   :  { %v602_v5 = vsel %vm601_vm14, %v905_v62, %v598_v2 }
 0xe60   :  { %v607_v8 = vsel %vm604_vm15, %v606_v6, %v602_v5 }
 0xe61   :  { %v613_v12 = vmul.f32 %v611_v11, %v607_v8 }
 0xebe   :  { %v616_v7 = vpop.permute.xlu0 %615 }
 0xebf   :  { %v618_v9 = vmul.f32 %v616_v7, %v607_v8 }
 0xec1   :  { %620 = vrot.lane.b32.xlu1 %v618_v9, %s1059_s17 }
 0xf33   :  { %v621_v13 = vpop.permute.xlu1 %620 }
 0xf34   :  { %v623_v14 = vadd.f32 %v621_v13, %v613_v12 }
 0xf36   :  { %906 = vtanh.f32 %v623_v14  ;;  %v685_v40 = vrot.slane %v623_v14, 6 }
 0xf3c   :  { %v907_v15 = vpop.eup %906 }
 0xf3d   :  { %626 = vrot.lane.b32.xlu2 %v907_v15, %s1059_s17 }
 0xf97   :  { %v627_v16 = vpop.permute.xlu2 %626 }
 0xf98   :  { %v629_v17 = vmul.f32 %v627_v16, %v607_v8 }
 0xf9a   :  { %v635_v18 = vrot.slane %v629_v17, 4 }
 0xf9c   :  { %636 = vrot.lane.b32.xlu0 %v635_v18, %s1060_s3 }
0x100e   :  { %v637_v19 = vpop.permute.xlu0 %636 }
0x100f   :  { %836 = vmatmul.msk.f32.vlgmr.msra.gmra.mxu1 %vm129_vm6, %v637_v19 }
0x108c   :  { %v657_v20 = vpop.f32.mrf.mxu1 }
0x108d   :  { %v661_v21 = vrot.slane %v657_v20, 2 }
0x108f   :  { %v663_v22 = vadd.f32 %v661_v21, %v1206_v59 }
0x1091   :  { %908 = vtanh.f32 %v663_v22  ;;  %v837_v24 = vmul.f32 -1.442695, %v663_v22 }
0x1093   :  { %910 = vpow2.f32 %v837_v24 }
0x1097   :  { %v909_v23 = vpop.eup %908 }
0x1098   :  { %689 = vrot.lane.b32.xlu1 %v909_v23, %s1059_s17 }
0x1099   :  { %v911_v25 = vpop.eup %910 }
0x109a   :  { %v667_v26 = vadd.f32 1.0, %v911_v25 }
0x109c   :  { %912 = vrcp.f32 %v667_v26  ;;  %v679_v59 = vand.u32 2147483648, %v667_v26  ;;  %vm673_vm2 = vweird.f32 %v667_v26  ;;  %v677_v33 = vand.u32 2147483647, %v667_v26 }
0x109e   :  { %v680_v35 = vor.u32 1.1754944e-38, %v679_v59  ;;  %vm678_vm0 = vcmp.eq.f32.partialorder %v677_v33, 8.507059e+37 }
0x10a0   :  { %264 = vrot.lane.b32.xlu1 %v1181_v61, %s1060_s3 }
0x10a2   :  { %v913_v28 = vpop.eup %912 }
0x10a3   :  { %v669_v29 = vmul.f32 %v913_v28, %v667_v26  ;;  %vm674_vm1 = vweird.f32 %v913_v28 }
0x10a4   :  { %vm675_vm3 = vmor %vm673_vm2, %vm674_vm1 }
0x10a5   :  { %v670_v30 = vsub.f32 1.0, %v669_v29 }
0x10a7   :  { %v671_v31 = vmul.f32 %v913_v28, %v670_v30 }
0x10a8   :  { %557 = vrot.lane.b32.xlu1 %v555_v49, %s1060_s3 }
0x10a9   :  { %v672_v32 = vadd.f32 %v913_v28, %v671_v31 }
0x10ab   :  { %v676_v34 = vsel %vm675_vm3, %v913_v28, %v672_v32 }
0x10ac   :  { %v681_v36 = vsel %vm678_vm0, %v680_v35, %v676_v34 }
0x10ad   :  { %v687_v41 = vmul.f32 %v685_v40, %v681_v36 }
0x110a   :  { %v690_v61 = vpop.permute.xlu1 %689 }
0x110b   :  { %v692_v37 = vmul.f32 %v690_v61, %v681_v36 }
0x110d   :  { %694 = vrot.lane.b32.xlu2 %v692_v37, %s1059_s17 }
0x1112   :  { %v265_v38 = vpop.permute.xlu1 %264 }
0x1113   :  { %268 = vst.msk [vmem:[#allocation2] sm:$0xc] %vm267_vm4, %v265_v38 }
0x1115   :  { %339 = vrot.lane.b32.xlu2 %v1190_v27, %s1060_s3  ;;  %v716_v27 = vld [vmem:[#allocation9 + $0x18] sm:$0xff] }
0x1116   :  { %739 = vmatpush.msrb.mxu2 %v716_v27 }
0x1118   :  { %740 = vmatpush.msrb.mxu2 %v715_v46 }
0x111a   :  { %v558_v39 = vpop.permute.xlu1 %557  ;;  %741 = vmatpush.msrb.mxu2 %v714_v47 }
0x111b   :  { %560 = vst.msk [vmem:[#allocation2 + $0x8] sm:$0xc] %vm267_vm4, %v558_v39 }
0x111c   :  { %742 = vmatpush.msrb.mxu2 %v713_v48 }
0x111d   :  { %631 = vrot.lane.b32.xlu2 %v629_v17, %s1060_s3 }
0x1167   :  { %v695_v42 = vpop.permute.xlu2 %694 }
0x1168   :  { %v697_v43 = vadd.f32 %v695_v42, %v687_v41 }
0x116a   :  { %914 = vtanh.f32 %v697_v43 }
0x116f   :  { %v340_v10 = vpop.permute.xlu2 %339 }
0x1170   :  { %v915_v44 = vpop.eup %914  ;;  %343 = vst.msk [vmem:[#allocation2] sm:$0x30] %vm342_vm7, %v340_v10 }
0x1171   :  { %700 = vrot.lane.b32.xlu0 %v915_v44, %s1059_s17 }
0x1177   :  { %v632_v45 = vpop.permute.xlu2 %631 }
0x1178   :  { %634 = vst.msk [vmem:[#allocation2 + $0x8] sm:$0x30] %vm342_vm7, %v632_v45 }
0x1179   :  { %414 = vrot.lane.b32.xlu0 %v1199_v54, %s1060_s3 }
0x11e3   :  { %v701_v49 = vpop.permute.xlu0 %700 }
0x11e4   :  { %v703_v50 = vmul.f32 %v701_v49, %v681_v36 }
0x11e6   :  { %705 = vrot.lane.b32.xlu0 %v703_v50, %s1060_s3 }
0x11eb   :  { %v415_v51 = vpop.permute.xlu0 %414 }
0x11ec   :  { %418 = vst.msk [vmem:[#allocation2] sm:$0xc0] %vm417_vm8, %v415_v51 }
0x11f3   :  { %v709_v52 = vld [vmem:[#allocation2] sm:$0xff] }
0x11f4   :  { %v711_v53 = vmax.f32 %v709_v52, 0.0 }
0x11f6   :  { %838 = vmatmul.msk.f32.vlgmr.msrb.gmra.mxu2 %vm129_vm6, %v711_v53 }
0x1258   :  { %v706_v54 = vpop.permute.xlu0 %705 }
0x1259   :  { %708 = vst.msk [vmem:[#allocation2 + $0x8] sm:$0xc0] %vm417_vm8, %v706_v54 }
0x1260   :  { %v710_v55 = vld [vmem:[#allocation2 + $0x8] sm:$0xff] }
0x1261   :  { %v712_v56 = vmax.f32 %v710_v55, 0.0 }
0x1263   :  { %839 = vmatmul.msk.f32.gmra.mxu2 %vm129_vm6, %v712_v56 }
0x1279   :  { %v744_v58 = vpop.f32.mrf.mxu2 }
0x127a   :  { %v745_v60 = vadd.f32 %v851_v57, %v744_v58 }
0x127c   :  { %v750_v62 = vsel %vm129_vm6, %v745_v60, -inf }
0x127d   :  { %751 = vmax.xlane.f32.xlu1 %v750_v62 }
0x12e6   :  { %v747_v63 = vpop.f32.mrf.mxu2 }
0x12e7   :  { %v748_v0 = vadd.f32 %v851_v57, %v747_v63 }
0x12e9   :  { %v753_v1 = vsel %vm129_vm6, %v748_v0, -inf }
0x12ea   :  { %754 = vmax.xlane.f32.xlu2 %v753_v1 }
0x12f0   :  { %v752_v2 = vpop.xlane.xlu1 %751 }
0x12f1   :  { %v756_v3 = vsub.f32 %v745_v60, %v752_v2 }
0x12f3   :  { %v758_v4 = vmul.f32 1.442695, %v756_v3 }
0x12f5   :  { %916 = vpow2.f32 %v758_v4 }
0x12fb   :  { %v917_v5 = vpop.eup %916 }
0x12fc   :  { %v762_v6 = vsel %vm129_vm6, %v917_v5, 0.0 }
0x12fd   :  { %763 = vadd.xlane.f32.xlu0 %v762_v6 }
0x135d   :  { %v755_v7 = vpop.xlane.xlu2 %754 }
0x135e   :  { %v757_v8 = vsub.f32 %v748_v0, %v755_v7 }
0x1360   :  { %v760_v9 = vmul.f32 1.442695, %v757_v8 }
0x1362   :  { %918 = vpow2.f32 %v760_v9 }
0x1368   :  { %v919_v11 = vpop.eup %918 }
0x1369   :  { %v765_v12 = vsel %vm129_vm6, %v919_v11, 0.0 }
0x136a   :  { %766 = vadd.xlane.f32.xlu2 %v765_v12 }
0x1370   :  { %v764_v13 = vpop.xlane.xlu0 %763 }
0x1371   :  { %920 = vrcp.f32 %v764_v13  ;;  %v779_v17 = vand.u32 2147483648, %v764_v13  ;;  %v777_v19 = vand.u32 2147483647, %v764_v13  ;;  %vm773_vm9 = vweird.f32 %v764_v13 }
0x1373   :  { %v780_v21 = vor.u32 1.1754944e-38, %v779_v17  ;;  %vm778_vm11 = vcmp.eq.f32.partialorder %v777_v19, 8.507059e+37 }
0x1377   :  { %v921_v14 = vpop.eup %920 }
0x1378   :  { %v769_v15 = vmul.f32 %v921_v14, %v764_v13  ;;  %vm774_vm5 = vweird.f32 %v921_v14 }
0x1379   :  { %vm775_vm10 = vmor %vm773_vm9, %vm774_vm5 }
0x137a   :  { %v770_v16 = vsub.f32 1.0, %v769_v15 }
0x137c   :  { %v771_v18 = vmul.f32 %v921_v14, %v770_v16 }
0x137e   :  { %v772_v20 = vadd.f32 %v921_v14, %v771_v18 }
0x1380   :  { %v776_v22 = vsel %vm775_vm10, %v921_v14, %v772_v20 }
0x1381   :  { %v781_v23 = vsel %vm778_vm11, %v780_v21, %v776_v22 }
0x1382   :  { %v796_v24 = vmul.f32 %v917_v5, %v781_v23 }
0x1384   :  { %798 = vst.msk [vmem:[#allocation11] sm:$0xff] %vm129_vm6, %v796_v24 }
0x13dd   :  { %v767_v25 = vpop.xlane.xlu2 %766 }
0x13de   :  { %922 = vrcp.f32 %v767_v25  ;;  %v793_v30 = vand.u32 2147483648, %v767_v25  ;;  %v791_v32 = vand.u32 2147483647, %v767_v25  ;;  %vm787_vm13 = vweird.f32 %v767_v25 }
0x13e0   :  { %v794_v33 = vor.u32 1.1754944e-38, %v793_v30  ;;  %vm792_vm15 = vcmp.eq.f32.partialorder %v791_v32, 8.507059e+37 }
0x13e4   :  { %v923_v26 = vpop.eup %922 }
0x13e5   :  { %v783_v28 = vmul.f32 %v923_v26, %v767_v25  ;;  %vm788_vm12 = vweird.f32 %v923_v26 }
0x13e6   :  { %vm789_vm14 = vmor %vm787_vm13, %vm788_vm12 }
0x13e7   :  { %v784_v29 = vsub.f32 1.0, %v783_v28 }
0x13e9   :  { %v785_v31 = vmul.f32 %v923_v26, %v784_v29 }
0x13eb   :  { %v786_v59 = vadd.f32 %v923_v26, %v785_v31 }
0x13ed   :  { %v790_v34 = vsel %vm789_vm14, %v923_v26, %v786_v59 }
0x13ee   :  { %v795_v35 = vsel %vm792_vm15, %v794_v33, %v790_v34 }
0x13ef   :  { %v797_v61 = vmul.f32 %v919_v11, %v795_v35 }
0x13f1   :  { %799 = vst.msk [vmem:[#allocation11 + $0x8] sm:$0xff] %vm129_vm6, %v797_v61 }
0x13f2   :  { %812 = dma.vmem_to_hbm [thread:$0]  %s805_s20, 256, %s807_s23, [#allocation5], %s1053_s29, %s1053_s29, %s1054_s30  }
0x13f3   :  { %1050 = dma.done.wait [#allocation5], 256  }
0x13f4   :  { %1051 = vsyncadd [#allocation5], 4294967040 }
0x13f5   :  { %817 = vsyncpa [#allocation4], 1 }
0x13f6   :  { %818 = vsyncpa [#allocation7], 1 }
0x13f7   :  { %819 = vsyncpa [#allocation10], 1 }
0x13f8   :  { %820 = vsyncpa [#allocation5], 1 }

</bundles_post_ra>
